<compile_context>
chip_gen: v5e
topology: v5e:2x2
jax: 0.10.0
libtpu: 0.0.40
codegen_flags: <defaults>
</compile_context>

<pallas_src>
import jax
import jax.numpy as jnp
from jax.experimental import pallas as pl
from jax.experimental.pallas import tpu as pltpu


# ----------------------------------------------------------------------------
# Production path: Dropout(p=0.0) is the identity -> no kernel at all.
# This is the path that should be wired into the model for p == 0.0.
# ----------------------------------------------------------------------------
def dropout_p0(x: jax.Array) -> jax.Array:
    """Dropout with p = 0.0: keep-prob 1.0, scale 1.0 -> identity."""
    return x


# ----------------------------------------------------------------------------
# Pallas kernel template (kept for p > 0 dropout / benchmarking).
# ----------------------------------------------------------------------------
def _identity_copy_kernel(x_ref, o_ref):
    # p == 0.0 path: every element kept, scale 1/(1-p) == 1.0, so no VPU op —
    # just stream the tile through VMEM.
    # TODO(synk): for p > 0, seed with pltpu.prng_seed(seed + pl.program_id(0))
    # (per-tile seed, otherwise every tile gets the same mask), draw
    # pltpu.prng_random_bits(tile_shape) (uint32), compare against a
    # precomputed uint32 threshold, and fuse the 1/(1-p) scale into a single
    # jnp.where — all of which stays hidden under the HBM-bound DMA stream.
    o_ref[...] = x_ref[...]


def _sublane_multiple(dtype) -> int:
    """Required sublane (second-minor) multiple for packed, unmasked tiles."""
    itemsize = jnp.dtype(dtype).itemsize
    return {4: 8, 2: 16, 1: 32}.get(itemsize, 8)


_MAX_LANE_COLS = 16384  # search cap for the lane (last) dimension


def _aligned_2d_shape(shape, dtype):
    """Pick (rows, cols) with cols % 128 == 0 and rows % sublane(dtype) == 0,
    preferring the LARGEST lane dimension so every vld/vst is unmasked and
    lane-dense.  Returns (rows, cols, aligned)."""
    total = 1
    for d in shape:
        total *= int(d)
    sub = _sublane_multiple(dtype)
    best_cols = None
    cols = 128
    limit = min(total, _MAX_LANE_COLS)
    while cols <= limit:
        if total % cols == 0 and (total // cols) % sub == 0:
            best_cols = cols
        cols += 128
    if best_cols is not None:
        return total // best_cols, best_cols, True
    # Fallback: no aligned factorization exists; keep the original trailing
    # dim and use a single full-array block (legal, but masked -> slower).
    last = int(shape[-1]) if len(shape) >= 1 else 1
    last = max(last, 1)
    return total // last, last, False


# Per-tile byte budget for the tiled path.  in + out, each double-buffered
# => 4 live buffers; 4 * 2 MiB = 8 MiB <= half of v5e's 16 MiB default scoped
# VMEM and comfortably inside v6e (32 MiB scoped) / v7x (32 MiB scoped,
# 64 MiB physical shared by 2 TCs).
_TILE_BYTES = 2 * 1024 * 1024

# Below this the grid would effectively have one step anyway; a single
# VMEM-resident block avoids per-step overhead (~0.35 us/step).
_SINGLE_BLOCK_BYTES = 1 * 1024 * 1024


def _compute_tile_rows(rows: int, cols: int, itemsize: int, sub: int) -> int:
    row_bytes = cols * itemsize
    tile_rows = max(sub, (_TILE_BYTES // row_bytes) // sub * sub)
    # Ensure the grid has >= 2 steps so consecutive tiles' in/out DMAs overlap
    # and both v7x TensorCores get work under "parallel" semantics.
    half = max(sub, (rows // 2) // sub * sub)
    return min(tile_rows, half)


def dropout_p0_pallas(x: jax.Array) -> jax.Array:
    """Dropout(p=0.0) forward via a Pallas TPU kernel (identity copy)."""
    orig_shape = x.shape
    rows, cols, aligned = _aligned_2d_shape(orig_shape, x.dtype)
    x2d = x.reshape(rows, cols)
    itemsize = x2d.dtype.itemsize
    nbytes = rows * cols * itemsize
    sub = _sublane_multiple(x2d.dtype)

    if (not aligned) or nbytes <= _SINGLE_BLOCK_BYTES or rows < 2 * sub:
        # Tiny (or un-factorable) tensor: one VMEM-resident block, no grid.
        # NOTE: input_output_aliases aliases the HBM buffers only (and only
        # avoids a copy if the caller donates x); the in/out VMEM tiles are
        # still separate, hence explicit vmem_limit headroom of 2*nbytes+4MiB.
        out = pl.pallas_call(
            _identity_copy_kernel,
            out_shape=jax.ShapeDtypeStruct((rows, cols), x2d.dtype),
            in_specs=[pl.BlockSpec(memory_space=pltpu.MemorySpace.VMEM)],
            out_specs=pl.BlockSpec(memory_space=pltpu.MemorySpace.VMEM),
            input_output_aliases={0: 0},
            compiler_params=pltpu.CompilerParams(
                vmem_limit_bytes=int(max(2 * nbytes + (4 << 20), 16 << 20)),
            ),
        )(x2d)
    else:
        # Tiled, pipelined path: stores of tile i overlap loads of tile i+1.
        tile_rows = _compute_tile_rows(rows, cols, itemsize, sub)
        grid = (pl.cdiv(rows, tile_rows),)
        out = pl.pallas_call(
            _identity_copy_kernel,
            out_shape=jax.ShapeDtypeStruct((rows, cols), x2d.dtype),
            grid_spec=pltpu.PrefetchScalarGridSpec(
                num_scalar_prefetch=0,
                grid=grid,
                in_specs=[pl.BlockSpec((tile_rows, cols), lambda i: (i, 0))],
                out_specs=pl.BlockSpec((tile_rows, cols), lambda i: (i, 0)),
            ),
            input_output_aliases={0: 0},
            compiler_params=pltpu.CompilerParams(
                dimension_semantics=("parallel",),
            ),
        )(x2d)

    return out.reshape(orig_shape)


if __name__ == "__main__":
    key = jax.random.PRNGKey(0)
    # Shape implied by the module's forward: NHWC [1, 14, 14, 1536] (~1.2 MB).
    x428 = jax.random.normal(key, (1, 14, 14, 1536), dtype=jnp.float32)

    # Production path: zero-cost identity (no kernel launch).
    x429_fast = dropout_p0(x428)

    # Kernel template path (takes the tiled/pipelined branch at this size):
    x429_kernel = dropout_p0_pallas(x428)
    jax.block_until_ready(x429_kernel)

    assert x429_kernel.shape == x428.shape
    assert x429_kernel.dtype == x428.dtype
    assert bool(jnp.all(x429_kernel == x428))
    assert x429_fast.shape == x428.shape
    assert bool(jnp.all(x429_fast == x428))

    # Exercise the tiny-tensor single-block branch as well.
    x_small = jax.random.normal(jax.random.PRNGKey(1), (8, 128), dtype=jnp.float32)
    y_small = dropout_p0_pallas(x_small)
    jax.block_until_ready(y_small)
    assert bool(jnp.all(y_small == x_small))

    print("KERNEL_OK")
</pallas_src>

<mosaic_0001>
module attributes {stable_mosaic.version = 11 : i64} {
  func.func @_identity_copy_kernel(%arg0: i32, %arg1: memref<8x12544xf32, #tpu.memory_space<vmem>>, %arg2: memref<8x12544xf32, #tpu.memory_space<vmem>>) attributes {dimension_semantics = [#tpu.dimension_semantics<parallel>], iteration_bounds = array<i64: 3>, scalar_prefetch = 0 : i64, scratch_operands = 0 : i64, tpu.core_type = #tpu.core_type<tc>, window_params = [{transform_indices = @transform_0, window_bounds = array<i64: 8, 12544>}, {transform_indices = @transform_1, window_bounds = array<i64: 8, 12544>}]} {
    %c0 = arith.constant 0 : index
    %c0_0 = arith.constant 0 : index
    %0 = vector.load %arg1[%c0, %c0_0] : memref<8x12544xf32, #tpu.memory_space<vmem>>, vector<8x12544xf32>
    %c0_1 = arith.constant 0 : index
    %c0_2 = arith.constant 0 : index
    %1 = vector.load %arg2[%c0_1, %c0_2] : memref<8x12544xf32, #tpu.memory_space<vmem>>, vector<8x12544xf32>
    tpu.vector_store %arg2[%c0_1, %c0_2], %0 {strides = array<i32>} : memref<8x12544xf32, #tpu.memory_space<vmem>>, vector<8x12544xf32>,
    return
  }
  func.func @transform_0(%arg0: i32) -> (i32, i32) {
    %c0_i32 = arith.constant 0 : i32
    %c0_i32_0 = arith.constant 0 : i32
    return %arg0, %c0_i32 : i32, i32
  }
  func.func @transform_1(%arg0: i32) -> (i32, i32) {
    %c0_i32 = arith.constant 0 : i32
    %c0_i32_0 = arith.constant 0 : i32
    return %arg0, %c0_i32 : i32, i32
  }
}

</mosaic_0001>

<bundles_post_ra>
// kernel: tpu_custom_call.1
= control target key start
LH: loop header
LB: loop body
LE: loop exit
PB: predicated region body
PF: predicated region fallthrough
CT: control target
= control target key end

     0   :  { %6 = vsyncpa [#allocation3], 0  ;;  %s900_s0 = inlined_call_operand.hbm [shape: f32[24,12544], index: 0, kind: input, shape index: {}, may-alias: {0,1}]   ;;  %s901_s1 = inlined_call_operand.hbm [shape: f32[24,12544], index: 1, kind: output, shape index: {}, may-alias: {0,1}]  }
   0x1   :  { %8 = vsyncpa [#allocation3 + $0x1], 0 }
   0x2   :  { %9 = vsyncpa [#allocation4], 0 }
   0x3   :  { %11 = vsyncpa [#allocation4 + $0x1], 0  ;;  %s584_s6 = smov 0   ;;  %s586_s7 = smov 0  }
   0x4   :  { %s588_s8 = smov 0   ;;  %s590_s9 = smov 0  }
   0x5 LB: > { %s605_s10 = sadd.s32 4294967295, %s572_s9   ;;  %s418_s11 = sadd.s32 4294967294, %s572_s9   ;;  %s572_s9 = sphi %s590_s9, %s909_s9   ;;  %s568_s8 = sphi %s588_s8, %s908_s8   ;;  %s564_s7 = sphi %s586_s7, %s907_s7   ;;  %s560_s6 = sphi %s584_s6, %s906_s6  }
   0x6   : > { %s609_s12 = sadd.s32 1, %s572_s9   ;;  %s24_s13 = sadd.s32 1, %s568_s8 }
   0x7   : > { %s21_s14 = ssub.s32 %s572_s9, %s609_s12  ;;  %p31_p0 = scmp.ne.s32.totalorder %s568_s8, %s564_s7 }
   0x8   : > { %p22_p1 = scmp.eq.s32.totalorder %s21_s14, 0  ;;  %p32_p2 = scmp.eq.s32.totalorder %s572_s9, 0 }
   0x9   : > { %p37_p3 = scmp.ne.s32.totalorder %s564_s7, %s560_s6  ;;  %p38_p4 = scmp.eq.s32.totalorder %s605_s10, 0 }
   0xa   : > { %s621_s15 = scalar_select %p22_p1, %s568_s8, %s24_s13  }
   0xb   : > { %p33_p5 = por %p32_p2, %p31_p0  ;;  %p623_p6 = por %p38_p4, %p37_p3 }
   0xc   : > { %p61_p7 = scmp.eq.s32.totalorder %s605_s10, 2  ;;  %p67_p8 = scmp.eq.s32.totalorder %s418_s11, 2 }
   0xd   : > { %p442_p9 = scmp.lt.s32.totalorder %s572_s9, 3  ;;  %s87_s19 = sand.u32 1, %s568_s8  }
   0xe   : > { %p629_p10 = por %p61_p7, %p31_p0  ;;  %p633_p11 = por %p67_p8, %p37_p3 }
   0xf   : > { %s427_s20 = smul.u32 784, %s572_s9  ;;  %p642_p12 = pnand %p442_p9, %p33_p5 }
  0x10   : > { %s426_s21 = smul.u32 784, %s87_s19  ;;  %s88_s29 = scalar_lea.sflag [#allocation3], %s87_s19 }
  0x11   : > { %s96_s24 = scalar_lea.hbm %s900_s0, %s427_s20  ;;  %p480_p0 = pneg %p642_p12 }
  0x12   : > { %s98_s26 = sshll.u32 %s96_s24, 4  ;;  %s91_s27 = scalar_lea.vmem [#allocation2], %s426_s21  ;;  %s99_s26 = int_to_ptr.hbm [resolvable:$true] %s98_s26 }
  0x13   : > { %s100_s28 = sshll.u32 %s91_s27, 4  ;;  %s476_s30 = sshra.s32 %s99_s26, 4  ;;  %s101_s28 = int_to_ptr.vmem [resolvable:$true] %s100_s28  ;;  %s477_s30 = int_to_ptr.hbm [resolvable:$true] %s476_s30 }
  0x14   : > { %s478_s2 = scalar_lea.hbm %s477_s30, 784  ;;  %s483_s5 = scalar_lea.hbm %s900_s0, 2352 }
  0x15   : > { %p479_p13 = scmp.ne.s32.totalorder %s477_s30, %s478_s2  ;;  %p484_p3 = scmp.lt.s32.totalorder %s477_s30, %s900_s0 }
  0x16   : > { %p485_p4 = scmp.lt.s32.totalorder %s483_s5, %s478_s2 }
  0x17   : > { %p481_p1 = pnand %p480_p0, %p479_p13 }
  0x18   : > { %p486_p5 = por %p485_p4, %p484_p3 }
  0x19   : > { %p482_p2 = pneg %p481_p1 }
  0x1b   : > { %p487_p7 = pnand %p486_p5, %p482_p2 }
  0x1d   : > { %490 = shalt.err (!%p487_p7)
}
  0x1e   : > { %437 = dma.hbm_to_vmem [thread:$0]  (!%p642_p12), %s99_s26, 12544, %s101_s28, %s88_s29  }
  0x1f   : > { %p422_p8 = scmp.ge.s32.totalorder %s572_s9, 1  ;;  %p105_p9 = scmp.lt.s32.totalorder %s572_s9, 4 }
  0x21   : > { %p106_p13 = pnand %p422_p8, %p105_p9 }
  0x22   : > { %s659_s14 = sand.u32 (!%p106_p13), 1, %s564_s7  }
  0x23   : > { %109 = sbr.rel (%p106_p13) target bundleno = 142 (0x8e), region = 24  ;;  %s112_s20 = scalar_lea.sflag (!%p106_p13), [#allocation3], %s659_s14 }
  0x24   : > { %s428_s19 = smul.u32 (!%p106_p13), 784, %s659_s14 }
  0x26   : > { %s663_s21 = scalar_lea.vmem (!%p106_p13), [#allocation2], %s428_s19 }
  0x28   : > { %551 = dma.done.wait (%p623_p6), %s112_s20, 12544  }
  0x29   : > { %553 = vsyncadd (%p623_p6), %s112_s20, 4294954752  ;;  %v135_v0 = vld [vmem:[%s663_s21] sm:$0xff]  ;;  %v136_v1 = vld [vmem:[%s663_s21 + $0x8] sm:$0xff]  ;;  %s672_s22 = scalar_lea.vmem [#allocation5], %s428_s19  ;;  %s429_s16 = smul.u32 784, %s605_s10 }
  0x2a   : > { %v137_v2 = vld [vmem:[%s663_s21 + $0x10] sm:$0xff]  ;;  %233 = vst [vmem:[%s672_s22] sm:$0xff] %v135_v0  ;;  %v138_v3 = vld [vmem:[%s663_s21 + $0x18] sm:$0xff]  ;;  %v139_v4 = vld [vmem:[%s663_s21 + $0x20] sm:$0xff]  ;;  %s345_s10 = sshll.u32 %s672_s22, 4  ;;  %s332_s27 = scalar_lea.sflag [#allocation4], %s659_s14  ;;  %s346_s10 = int_to_ptr.vmem [resolvable:$true] %s345_s10 }
  0x2b   : > { %234 = vst [vmem:[%s672_s22 + $0x8] sm:$0xff] %v136_v1  ;;  %v140_v5 = vld [vmem:[%s663_s21 + $0x28] sm:$0xff]  ;;  %v141_v6 = vld [vmem:[%s663_s21 + $0x30] sm:$0xff]  ;;  %v142_v7 = vld [vmem:[%s663_s21 + $0x38] sm:$0xff]  ;;  %s343_s25 = scalar_lea.hbm %s901_s1, %s429_s16  ;;  %s526_s3 = scalar_lea.hbm %s901_s1, 2352 }
  0x2c   : > { %235 = vst [vmem:[%s672_s22 + $0x10] sm:$0xff] %v137_v2  ;;  %v143_v8 = vld [vmem:[%s663_s21 + $0x40] sm:$0xff]  ;;  %v144_v9 = vld [vmem:[%s663_s21 + $0x48] sm:$0xff]  ;;  %v145_v10 = vld [vmem:[%s663_s21 + $0x50] sm:$0xff]  ;;  %s347_s26 = sshll.u32 %s343_s25, 4  ;;  %s348_s26 = int_to_ptr.hbm [resolvable:$true] %s347_s26 }
  0x2d   : > { %236 = vst [vmem:[%s672_s22 + $0x18] sm:$0xff] %v138_v3  ;;  %v146_v11 = vld [vmem:[%s663_s21 + $0x58] sm:$0xff]  ;;  %v147_v12 = vld [vmem:[%s663_s21 + $0x60] sm:$0xff]  ;;  %v148_v13 = vld [vmem:[%s663_s21 + $0x68] sm:$0xff]  ;;  %s520_s28 = sshra.s32 %s348_s26, 4  ;;  %s521_s28 = int_to_ptr.hbm [resolvable:$true] %s520_s28 }
  0x2e   : > { %237 = vst [vmem:[%s672_s22 + $0x20] sm:$0xff] %v139_v4  ;;  %v149_v14 = vld [vmem:[%s663_s21 + $0x70] sm:$0xff]  ;;  %v150_v15 = vld [vmem:[%s663_s21 + $0x78] sm:$0xff]  ;;  %v151_v16 = vld [vmem:[%s663_s21 + $0x80] sm:$0xff]  ;;  %s522_s29 = scalar_lea.hbm %s521_s28, 784  ;;  %p527_p1 = scmp.lt.s32.totalorder %s521_s28, %s901_s1 }
  0x2f   : > { %238 = vst [vmem:[%s672_s22 + $0x28] sm:$0xff] %v140_v5  ;;  %v152_v17 = vld [vmem:[%s663_s21 + $0x88] sm:$0xff]  ;;  %v153_v18 = vld [vmem:[%s663_s21 + $0x90] sm:$0xff]  ;;  %v154_v19 = vld [vmem:[%s663_s21 + $0x98] sm:$0xff]  ;;  %p523_p6 = scmp.ne.s32.totalorder %s521_s28, %s522_s29  ;;  %p528_p2 = scmp.lt.s32.totalorder %s526_s3, %s522_s29 }
  0x30   : > { %239 = vst [vmem:[%s672_s22 + $0x30] sm:$0xff] %v141_v6  ;;  %v155_v20 = vld [vmem:[%s663_s21 + $0xa0] sm:$0xff]  ;;  %v156_v21 = vld [vmem:[%s663_s21 + $0xa8] sm:$0xff]  ;;  %v157_v22 = vld [vmem:[%s663_s21 + $0xb0] sm:$0xff] }
  0x31   : > { %240 = vst [vmem:[%s672_s22 + $0x38] sm:$0xff] %v142_v7  ;;  %v158_v23 = vld [vmem:[%s663_s21 + $0xb8] sm:$0xff]  ;;  %v159_v24 = vld [vmem:[%s663_s21 + $0xc0] sm:$0xff]  ;;  %v160_v25 = vld [vmem:[%s663_s21 + $0xc8] sm:$0xff]  ;;  %p524_p12 = pnand %p523_p6, %p629_p10  ;;  %p529_p3 = por %p528_p2, %p527_p1 }
  0x32   : > { %241 = vst [vmem:[%s672_s22 + $0x40] sm:$0xff] %v143_v8  ;;  %v161_v26 = vld [vmem:[%s663_s21 + $0xd0] sm:$0xff]  ;;  %v162_v27 = vld [vmem:[%s663_s21 + $0xd8] sm:$0xff]  ;;  %v163_v28 = vld [vmem:[%s663_s21 + $0xe0] sm:$0xff] }
  0x33   : > { %242 = vst [vmem:[%s672_s22 + $0x48] sm:$0xff] %v144_v9  ;;  %v164_v29 = vld [vmem:[%s663_s21 + $0xe8] sm:$0xff]  ;;  %v165_v30 = vld [vmem:[%s663_s21 + $0xf0] sm:$0xff]  ;;  %v166_v31 = vld [vmem:[%s663_s21 + $0xf8] sm:$0xff]  ;;  %p525_p0 = pneg %p524_p12 }
  0x34   : > { %243 = vst [vmem:[%s672_s22 + $0x50] sm:$0xff] %v145_v10  ;;  %v167_v32 = vld [vmem:[%s663_s21 + $0x100] sm:$0xff]  ;;  %v168_v33 = vld [vmem:[%s663_s21 + $0x108] sm:$0xff]  ;;  %v169_v34 = vld [vmem:[%s663_s21 + $0x110] sm:$0xff] }
  0x35   : > { %244 = vst [vmem:[%s672_s22 + $0x58] sm:$0xff] %v146_v11  ;;  %v170_v35 = vld [vmem:[%s663_s21 + $0x118] sm:$0xff]  ;;  %v171_v36 = vld [vmem:[%s663_s21 + $0x120] sm:$0xff]  ;;  %v172_v37 = vld [vmem:[%s663_s21 + $0x128] sm:$0xff]  ;;  %p530_p4 = pnand %p529_p3, %p525_p0 }
  0x36   : > { %245 = vst [vmem:[%s672_s22 + $0x60] sm:$0xff] %v147_v12  ;;  %v173_v38 = vld [vmem:[%s663_s21 + $0x130] sm:$0xff]  ;;  %v174_v39 = vld [vmem:[%s663_s21 + $0x138] sm:$0xff]  ;;  %v175_v40 = vld [vmem:[%s663_s21 + $0x140] sm:$0xff] }
  0x37   : > { %246 = vst [vmem:[%s672_s22 + $0x68] sm:$0xff] %v148_v13  ;;  %v176_v41 = vld [vmem:[%s663_s21 + $0x148] sm:$0xff]  ;;  %v177_v42 = vld [vmem:[%s663_s21 + $0x150] sm:$0xff]  ;;  %v178_v43 = vld [vmem:[%s663_s21 + $0x158] sm:$0xff] }
  0x38   : > { %247 = vst [vmem:[%s672_s22 + $0x70] sm:$0xff] %v149_v14  ;;  %v179_v44 = vld [vmem:[%s663_s21 + $0x160] sm:$0xff]  ;;  %v180_v45 = vld [vmem:[%s663_s21 + $0x168] sm:$0xff]  ;;  %v181_v46 = vld [vmem:[%s663_s21 + $0x170] sm:$0xff] }
  0x39   : > { %248 = vst [vmem:[%s672_s22 + $0x78] sm:$0xff] %v150_v15  ;;  %v182_v47 = vld [vmem:[%s663_s21 + $0x178] sm:$0xff]  ;;  %v183_v48 = vld [vmem:[%s663_s21 + $0x180] sm:$0xff]  ;;  %v184_v49 = vld [vmem:[%s663_s21 + $0x188] sm:$0xff] }
  0x3a   : > { %249 = vst [vmem:[%s672_s22 + $0x80] sm:$0xff] %v151_v16  ;;  %v185_v50 = vld [vmem:[%s663_s21 + $0x190] sm:$0xff]  ;;  %v186_v51 = vld [vmem:[%s663_s21 + $0x198] sm:$0xff]  ;;  %v187_v52 = vld [vmem:[%s663_s21 + $0x1a0] sm:$0xff] }
  0x3b   : > { %250 = vst [vmem:[%s672_s22 + $0x88] sm:$0xff] %v152_v17  ;;  %v188_v53 = vld [vmem:[%s663_s21 + $0x1a8] sm:$0xff]  ;;  %v189_v54 = vld [vmem:[%s663_s21 + $0x1b0] sm:$0xff]  ;;  %v190_v55 = vld [vmem:[%s663_s21 + $0x1b8] sm:$0xff] }
  0x3c   : > { %251 = vst [vmem:[%s672_s22 + $0x90] sm:$0xff] %v153_v18  ;;  %v191_v56 = vld [vmem:[%s663_s21 + $0x1c0] sm:$0xff]  ;;  %v192_v57 = vld [vmem:[%s663_s21 + $0x1c8] sm:$0xff]  ;;  %v193_v58 = vld [vmem:[%s663_s21 + $0x1d0] sm:$0xff] }
  0x3d   : > { %252 = vst [vmem:[%s672_s22 + $0x98] sm:$0xff] %v154_v19  ;;  %v194_v59 = vld [vmem:[%s663_s21 + $0x1d8] sm:$0xff]  ;;  %v195_v60 = vld [vmem:[%s663_s21 + $0x1e0] sm:$0xff]  ;;  %v196_v61 = vld [vmem:[%s663_s21 + $0x1e8] sm:$0xff] }
  0x3e   : > { %253 = vst [vmem:[%s672_s22 + $0xa0] sm:$0xff] %v155_v20  ;;  %v197_v62 = vld [vmem:[%s663_s21 + $0x1f0] sm:$0xff]  ;;  %v198_v63 = vld [vmem:[%s663_s21 + $0x1f8] sm:$0xff]  ;;  %v199_v0 = vld [vmem:[%s663_s21 + $0x200] sm:$0xff] }
  0x3f   : > { %254 = vst [vmem:[%s672_s22 + $0xa8] sm:$0xff] %v156_v21  ;;  %v200_v1 = vld [vmem:[%s663_s21 + $0x208] sm:$0xff]  ;;  %v201_v2 = vld [vmem:[%s663_s21 + $0x210] sm:$0xff]  ;;  %v202_v3 = vld [vmem:[%s663_s21 + $0x218] sm:$0xff] }
  0x40   : > { %255 = vst [vmem:[%s672_s22 + $0xb0] sm:$0xff] %v157_v22  ;;  %v203_v4 = vld [vmem:[%s663_s21 + $0x220] sm:$0xff]  ;;  %v204_v5 = vld [vmem:[%s663_s21 + $0x228] sm:$0xff]  ;;  %v205_v6 = vld [vmem:[%s663_s21 + $0x230] sm:$0xff] }
  0x41   : > { %256 = vst [vmem:[%s672_s22 + $0xb8] sm:$0xff] %v158_v23  ;;  %v206_v7 = vld [vmem:[%s663_s21 + $0x238] sm:$0xff]  ;;  %v207_v8 = vld [vmem:[%s663_s21 + $0x240] sm:$0xff]  ;;  %v208_v9 = vld [vmem:[%s663_s21 + $0x248] sm:$0xff] }
  0x42   : > { %257 = vst [vmem:[%s672_s22 + $0xc0] sm:$0xff] %v159_v24  ;;  %v209_v10 = vld [vmem:[%s663_s21 + $0x250] sm:$0xff]  ;;  %v210_v11 = vld [vmem:[%s663_s21 + $0x258] sm:$0xff]  ;;  %v211_v12 = vld [vmem:[%s663_s21 + $0x260] sm:$0xff] }
  0x43   : > { %258 = vst [vmem:[%s672_s22 + $0xc8] sm:$0xff] %v160_v25  ;;  %v212_v13 = vld [vmem:[%s663_s21 + $0x268] sm:$0xff]  ;;  %v213_v14 = vld [vmem:[%s663_s21 + $0x270] sm:$0xff]  ;;  %v214_v15 = vld [vmem:[%s663_s21 + $0x278] sm:$0xff] }
  0x44   : > { %259 = vst [vmem:[%s672_s22 + $0xd0] sm:$0xff] %v161_v26  ;;  %v215_v16 = vld [vmem:[%s663_s21 + $0x280] sm:$0xff]  ;;  %v216_v17 = vld [vmem:[%s663_s21 + $0x288] sm:$0xff]  ;;  %v217_v18 = vld [vmem:[%s663_s21 + $0x290] sm:$0xff] }
  0x45   : > { %260 = vst [vmem:[%s672_s22 + $0xd8] sm:$0xff] %v162_v27  ;;  %v218_v19 = vld [vmem:[%s663_s21 + $0x298] sm:$0xff]  ;;  %v219_v20 = vld [vmem:[%s663_s21 + $0x2a0] sm:$0xff]  ;;  %v220_v21 = vld [vmem:[%s663_s21 + $0x2a8] sm:$0xff] }
  0x46   : > { %261 = vst [vmem:[%s672_s22 + $0xe0] sm:$0xff] %v163_v28  ;;  %v221_v22 = vld [vmem:[%s663_s21 + $0x2b0] sm:$0xff]  ;;  %v222_v23 = vld [vmem:[%s663_s21 + $0x2b8] sm:$0xff]  ;;  %v223_v24 = vld [vmem:[%s663_s21 + $0x2c0] sm:$0xff] }
  0x47   : > { %262 = vst [vmem:[%s672_s22 + $0xe8] sm:$0xff] %v164_v29  ;;  %v224_v25 = vld [vmem:[%s663_s21 + $0x2c8] sm:$0xff]  ;;  %v225_v26 = vld [vmem:[%s663_s21 + $0x2d0] sm:$0xff]  ;;  %v226_v27 = vld [vmem:[%s663_s21 + $0x2d8] sm:$0xff] }
  0x48   : > { %263 = vst [vmem:[%s672_s22 + $0xf0] sm:$0xff] %v165_v30  ;;  %v227_v28 = vld [vmem:[%s663_s21 + $0x2e0] sm:$0xff]  ;;  %v228_v29 = vld [vmem:[%s663_s21 + $0x2e8] sm:$0xff]  ;;  %v229_v30 = vld [vmem:[%s663_s21 + $0x2f0] sm:$0xff] }
  0x49   : > { %264 = vst [vmem:[%s672_s22 + $0xf8] sm:$0xff] %v166_v31  ;;  %v230_v31 = vld [vmem:[%s663_s21 + $0x2f8] sm:$0xff] }
  0x4a   : > { %265 = vst [vmem:[%s672_s22 + $0x100] sm:$0xff] %v167_v32  ;;  %v231_v32 = vld [vmem:[%s663_s21 + $0x300] sm:$0xff] }
  0x4b   : > { %266 = vst [vmem:[%s672_s22 + $0x108] sm:$0xff] %v168_v33  ;;  %v232_v33 = vld [vmem:[%s663_s21 + $0x308] sm:$0xff] }
  0x4c   : > { %267 = vst [vmem:[%s672_s22 + $0x110] sm:$0xff] %v169_v34 }
  0x4d   : > { %268 = vst [vmem:[%s672_s22 + $0x118] sm:$0xff] %v170_v35 }
  0x4e   : > { %269 = vst [vmem:[%s672_s22 + $0x120] sm:$0xff] %v171_v36 }
  0x4f   : > { %270 = vst [vmem:[%s672_s22 + $0x128] sm:$0xff] %v172_v37 }
  0x50   : > { %271 = vst [vmem:[%s672_s22 + $0x130] sm:$0xff] %v173_v38 }
  0x51   : > { %272 = vst [vmem:[%s672_s22 + $0x138] sm:$0xff] %v174_v39 }
  0x52   : > { %273 = vst [vmem:[%s672_s22 + $0x140] sm:$0xff] %v175_v40 }
  0x53   : > { %274 = vst [vmem:[%s672_s22 + $0x148] sm:$0xff] %v176_v41 }
  0x54   : > { %275 = vst [vmem:[%s672_s22 + $0x150] sm:$0xff] %v177_v42 }
  0x55   : > { %276 = vst [vmem:[%s672_s22 + $0x158] sm:$0xff] %v178_v43 }
  0x56   : > { %277 = vst [vmem:[%s672_s22 + $0x160] sm:$0xff] %v179_v44 }
  0x57   : > { %278 = vst [vmem:[%s672_s22 + $0x168] sm:$0xff] %v180_v45 }
  0x58   : > { %279 = vst [vmem:[%s672_s22 + $0x170] sm:$0xff] %v181_v46 }
  0x59   : > { %280 = vst [vmem:[%s672_s22 + $0x178] sm:$0xff] %v182_v47 }
  0x5a   : > { %281 = vst [vmem:[%s672_s22 + $0x180] sm:$0xff] %v183_v48 }
  0x5b   : > { %282 = vst [vmem:[%s672_s22 + $0x188] sm:$0xff] %v184_v49 }
  0x5c   : > { %283 = vst [vmem:[%s672_s22 + $0x190] sm:$0xff] %v185_v50 }
  0x5d   : > { %284 = vst [vmem:[%s672_s22 + $0x198] sm:$0xff] %v186_v51 }
  0x5e   : > { %285 = vst [vmem:[%s672_s22 + $0x1a0] sm:$0xff] %v187_v52 }
  0x5f   : > { %286 = vst [vmem:[%s672_s22 + $0x1a8] sm:$0xff] %v188_v53 }
  0x60   : > { %287 = vst [vmem:[%s672_s22 + $0x1b0] sm:$0xff] %v189_v54 }
  0x61   : > { %288 = vst [vmem:[%s672_s22 + $0x1b8] sm:$0xff] %v190_v55 }
  0x62   : > { %289 = vst [vmem:[%s672_s22 + $0x1c0] sm:$0xff] %v191_v56 }
  0x63   : > { %290 = vst [vmem:[%s672_s22 + $0x1c8] sm:$0xff] %v192_v57 }
  0x64   : > { %291 = vst [vmem:[%s672_s22 + $0x1d0] sm:$0xff] %v193_v58 }
  0x65   : > { %292 = vst [vmem:[%s672_s22 + $0x1d8] sm:$0xff] %v194_v59 }
  0x66   : > { %293 = vst [vmem:[%s672_s22 + $0x1e0] sm:$0xff] %v195_v60 }
  0x67   : > { %294 = vst [vmem:[%s672_s22 + $0x1e8] sm:$0xff] %v196_v61 }
  0x68   : > { %295 = vst [vmem:[%s672_s22 + $0x1f0] sm:$0xff] %v197_v62 }
  0x69   : > { %296 = vst [vmem:[%s672_s22 + $0x1f8] sm:$0xff] %v198_v63 }
  0x6a   : > { %297 = vst [vmem:[%s672_s22 + $0x200] sm:$0xff] %v199_v0 }
  0x6b   : > { %298 = vst [vmem:[%s672_s22 + $0x208] sm:$0xff] %v200_v1 }
  0x6c   : > { %299 = vst [vmem:[%s672_s22 + $0x210] sm:$0xff] %v201_v2 }
  0x6d   : > { %300 = vst [vmem:[%s672_s22 + $0x218] sm:$0xff] %v202_v3 }
  0x6e   : > { %301 = vst [vmem:[%s672_s22 + $0x220] sm:$0xff] %v203_v4 }
  0x6f   : > { %302 = vst [vmem:[%s672_s22 + $0x228] sm:$0xff] %v204_v5 }
  0x70   : > { %303 = vst [vmem:[%s672_s22 + $0x230] sm:$0xff] %v205_v6 }
  0x71   : > { %304 = vst [vmem:[%s672_s22 + $0x238] sm:$0xff] %v206_v7 }
  0x72   : > { %305 = vst [vmem:[%s672_s22 + $0x240] sm:$0xff] %v207_v8 }
  0x73   : > { %306 = vst [vmem:[%s672_s22 + $0x248] sm:$0xff] %v208_v9 }
  0x74   : > { %307 = vst [vmem:[%s672_s22 + $0x250] sm:$0xff] %v209_v10 }
  0x75   : > { %308 = vst [vmem:[%s672_s22 + $0x258] sm:$0xff] %v210_v11 }
  0x76   : > { %309 = vst [vmem:[%s672_s22 + $0x260] sm:$0xff] %v211_v12 }
  0x77   : > { %310 = vst [vmem:[%s672_s22 + $0x268] sm:$0xff] %v212_v13 }
  0x78   : > { %311 = vst [vmem:[%s672_s22 + $0x270] sm:$0xff] %v213_v14 }
  0x79   : > { %312 = vst [vmem:[%s672_s22 + $0x278] sm:$0xff] %v214_v15 }
  0x7a   : > { %313 = vst [vmem:[%s672_s22 + $0x280] sm:$0xff] %v215_v16 }
  0x7b   : > { %314 = vst [vmem:[%s672_s22 + $0x288] sm:$0xff] %v216_v17 }
  0x7c   : > { %315 = vst [vmem:[%s672_s22 + $0x290] sm:$0xff] %v217_v18 }
  0x7d   : > { %316 = vst [vmem:[%s672_s22 + $0x298] sm:$0xff] %v218_v19 }
  0x7e   : > { %317 = vst [vmem:[%s672_s22 + $0x2a0] sm:$0xff] %v219_v20 }
  0x7f   : > { %318 = vst [vmem:[%s672_s22 + $0x2a8] sm:$0xff] %v220_v21 }
  0x80   : > { %319 = vst [vmem:[%s672_s22 + $0x2b0] sm:$0xff] %v221_v22 }
  0x81   : > { %320 = vst [vmem:[%s672_s22 + $0x2b8] sm:$0xff] %v222_v23 }
  0x82   : > { %321 = vst [vmem:[%s672_s22 + $0x2c0] sm:$0xff] %v223_v24 }
  0x83   : > { %322 = vst [vmem:[%s672_s22 + $0x2c8] sm:$0xff] %v224_v25 }
  0x84   : > { %323 = vst [vmem:[%s672_s22 + $0x2d0] sm:$0xff] %v225_v26 }
  0x85   : > { %324 = vst [vmem:[%s672_s22 + $0x2d8] sm:$0xff] %v226_v27 }
  0x86   : > { %325 = vst [vmem:[%s672_s22 + $0x2e0] sm:$0xff] %v227_v28 }
  0x87   : > { %326 = vst [vmem:[%s672_s22 + $0x2e8] sm:$0xff] %v228_v29 }
  0x88   : > { %327 = vst [vmem:[%s672_s22 + $0x2f0] sm:$0xff] %v229_v30 }
  0x89   : > { %328 = vst [vmem:[%s672_s22 + $0x2f8] sm:$0xff] %v230_v31 }
  0x8a   : > { %329 = vst [vmem:[%s672_s22 + $0x300] sm:$0xff] %v231_v32 }
  0x8b   : > { %330 = vst [vmem:[%s672_s22 + $0x308] sm:$0xff] %v232_v33 }
  0x8c   : > { %533 = shalt.err (!%p530_p4)
}
  0x8d   : > { %432 = dma.vmem_to_hbm [thread:$0]  (%p629_p10), %s346_s10, 12544, %s348_s26, %s332_s27  }
  0x8e PF: > { %p443_p5 = scmp.ge.s32.totalorder %s572_s9, 2  ;;  %s359_s11 = sand.u32 1, %s560_s6  }
  0x8f   : > { %s360_s13 = scalar_lea.sflag [#allocation4], %s359_s11 }
  0x90   : > { %p439_p7 = pnand %p443_p5, %p633_p11 }
  0x92   : > { %p440_p8 = pneg %p439_p7 }
  0x94   : > { %555 = dma.done.wait (%p440_p8), %s360_s13, 12544  }
  0x95   : > { %557 = vsyncadd (%p440_p8), %s360_s13, 4294954752  ;;  %p14_p9 = scmp.ge.s32.totalorder %s609_s12, 5   ;;  %s906_s6 = smov %s564_s7 }
  0x96   : > { %s907_s7 = smov %s568_s8  ;;  %s908_s8 = smov %s621_s15 }
  0x97   : > { %s909_s9 = smov %s609_s12  ;;  %16 = sbr.rel (!%p14_p9) target bundleno = 5 (0x5), region = 69 }
  0x9c   :  { %366 = vsyncpa [#allocation3], 1 }
  0x9d   :  { %368 = vsyncpa [#allocation3 + $0x1], 1 }
  0x9e   :  { %369 = vsyncpa [#allocation4], 1 }
  0x9f   :  { %371 = vsyncpa [#allocation4 + $0x1], 1 }

</bundles_post_ra>
